<compile_context>
chip_gen: v7x
topology: tpu7x:2x2x1
jax: 0.10.0
libtpu: 0.0.40
codegen_flags: <defaults>
</compile_context>

<pallas_src>
import math
from functools import partial

import numpy as np
import jax
import jax.numpy as jnp
from jax.experimental import pallas as pl
from jax.experimental.pallas import tpu as pltpu


def _build_pe_table(max_seq_len: int, d_model: int) -> np.ndarray:
    """Reproduce the exact (slightly non-standard) PyTorch init loop.

    NOTE: like the original, indexes pe[pos, i + 1] and thus requires even d_model.
    """
    pe = np.zeros((max_seq_len, d_model), dtype=np.float32)
    for pos in range(max_seq_len):
        for i in range(0, d_model, 2):
            pe[pos, i] = math.sin(pos / 10000 ** (2 * i / d_model))
            pe[pos, i + 1] = math.cos(pos / 10000 ** (2 * (i + 1) / d_model))
    return pe


def _pos_enc_kernel(x_ref, pe_ref, o_ref, *, scale):
    # x_ref/o_ref: (bb, ts, D); pe_ref: (1, ts, D) — broadcasts over the batch dim.
    # f32 math on the VPU is free relative to the HBM bound.
    x = x_ref[...].astype(jnp.float32)
    pe = pe_ref[...].astype(jnp.float32)
    o_ref[...] = (x * scale + pe).astype(o_ref.dtype)
    # TODO(synk): training-mode dropout (pltpu.prng_seed + pltpu.stateful_bernoulli)
    # is not implemented; eval-mode dropout is identity, matching the reference.


def _vmem_budget_bytes() -> int:
    """~75% of this generation's physical VMEM (64 MiB v7x, 128 MiB v5e/v6e)."""
    try:
        cap = int(pltpu.get_tpu_info().vmem_capacity_bytes)
    except Exception:
        cap = 64 << 20  # conservative fallback (v7x per-core VMEM)
    return (cap * 3) // 4


def positional_encoder(x: jax.Array, pe_table: jax.Array, d_model: int) -> jax.Array:
    """x: (B, S, D); pe_table: (max_seq_len, D) float32. Returns x.dtype."""
    B, S, D = x.shape
    assert D == d_model

    # ---- dtype / layout plumbing (free-ish XLA casts / reshapes) ---------------
    x_item = jnp.dtype(x.dtype).itemsize
    if jnp.issubdtype(x.dtype, jnp.floating) and x_item < 4:
        pe_dtype = x.dtype        # halve pe HBM traffic for bf16/f16 activations
    else:
        pe_dtype = jnp.float32    # exact for the f32 path
    pe_item = jnp.dtype(pe_dtype).itemsize

    pe_slab = pe_table[:S, :].astype(pe_dtype)                 # (S, D)

    # Lane-dense fold: last dim not a multiple of 128 -> masked partial stores.
    fold = (D % 128 != 0) and ((S * D) % 128 == 0)
    if fold:
        S_eff, D_eff = (S * D) // 128, 128
        x_in = x.reshape(B, S_eff, D_eff)
        pe_slab = pe_slab.reshape(1, S_eff, D_eff)
    else:
        S_eff, D_eff = S, D
        x_in = x
        pe_slab = pe_slab.reshape(1, S_eff, D_eff)

    # ---- tile sizing -----------------------------------------------------------
    budget = _vmem_budget_bytes()
    # ~5 MiB x-tiles on v7x (64 MiB VMEM), ~12 MiB on v5e/v6e (128 MiB VMEM).
    per_x_tile_target = (5 << 20) if budget <= (48 << 20) else (12 << 20)

    # Row alignment follows sublane packing: 8 (f32) / 16 (bf16,f16) / 32 (int8).
    row_align = 8 * max(1, 4 // x_item)

    # Budget per row at bb=1: double-buffered x + out tiles, double-buffered pe.
    bytes_per_row_b1 = D_eff * (4 * x_item + 2 * pe_item)
    max_rows_by_budget = max(row_align, (budget - (4 << 20)) // bytes_per_row_b1)
    target_rows = max(row_align, per_x_tile_target // max(D_eff * x_item, 1))
    ts = min(S_eff, target_rows, max_rows_by_budget)
    if ts < S_eff:
        ts = max(row_align, (ts // row_align) * row_align)
    else:
        ts = S_eff                                             # full-extent block is always legal
    num_s_tiles = pl.cdiv(S_eff, ts)

    # Fold batch into the block when it still fits: fewer, larger pipeline steps,
    # pe reused across B inside the body via jnp broadcasting.
    def _footprint(bb, pe_bufs):
        return 2 * bb * ts * D_eff * (2 * x_item) + pe_bufs * ts * D_eff * pe_item

    if B > 1 and _footprint(B, 2) + (4 << 20) <= budget:
        bb = B
        pe_single_buffer = False       # pe block changes every step -> keep it double-buffered
    else:
        bb = 1
        # pe's block index is constant across the inner batch loop; its second
        # buffer is dead weight, so single-buffer it and spend the VMEM on ts.
        pe_single_buffer = B > 1
    num_b_tiles = pl.cdiv(B, bb)

    pe_idx_map = lambda s, b: (0, s, 0)
    if pe_single_buffer:
        try:
            pe_spec = pl.BlockSpec((1, ts, D_eff), pe_idx_map,
                                   pipeline_mode=pl.Buffered(1))
        except TypeError:              # older jax without pipeline_mode kwarg
            pe_spec = pl.BlockSpec((1, ts, D_eff), pe_idx_map)
    else:
        pe_spec = pl.BlockSpec((1, ts, D_eff), pe_idx_map)

    vmem_need = _footprint(bb, 1 if pe_single_buffer else 2) + (4 << 20)
    vmem_limit = int(min(budget, max(vmem_need, 16 << 20)))

    scale = float(math.sqrt(d_model))

    out = pl.pallas_call(
        partial(_pos_enc_kernel, scale=scale),
        out_shape=jax.ShapeDtypeStruct((B, S_eff, D_eff), x.dtype),
        # Batch innermost: pe's block index (0, s, 0) is constant across the b
        # loop, so Pallas skips its re-DMA -> pe read from HBM once per S-tile.
        grid=(num_s_tiles, num_b_tiles),
        in_specs=[
            pl.BlockSpec((bb, ts, D_eff), lambda s, b: (b, s, 0)),   # x
            pe_spec,                                                 # pe (shared over batch)
        ],
        out_specs=pl.BlockSpec((bb, ts, D_eff), lambda s, b: (b, s, 0)),
        compiler_params=pltpu.CompilerParams(
            # S-tiles shard across v7x TensorCores; batch stays a sequential
            # inner loop so the pe re-DMA skip is preserved.
            dimension_semantics=("parallel", "arbitrary"),
            vmem_limit_bytes=vmem_limit,
        ),
    )(x_in, pe_slab)

    return out.reshape(B, S, D) if fold else out


def positional_encoder_ref(x, pe_table, d_model):
    S = x.shape[1]
    return x.astype(jnp.float32) * math.sqrt(d_model) + pe_table[None, :S, :]


if __name__ == "__main__":
    B, S, D = 2, 8, 32
    MAX_SEQ_LEN = 64  # small deterministic table (module default is 1000)

    key = jax.random.PRNGKey(0)
    x = jax.random.normal(key, (B, S, D), dtype=jnp.float32)
    pe_table = jnp.asarray(_build_pe_table(MAX_SEQ_LEN, D))

    out = positional_encoder(x, pe_table, d_model=D)
    out = jax.block_until_ready(out)

    ref = positional_encoder_ref(x, pe_table, D)
    np.testing.assert_allclose(np.asarray(out), np.asarray(ref), rtol=1e-6, atol=1e-6)

    print("KERNEL_OK")
</pallas_src>

<mosaic_0001>
module attributes {stable_mosaic.version = 11 : i64} {
  func.func @_pos_enc_kernel(%arg0: i32, %arg1: i32, %arg2: memref<2x2x128xf32, #tpu.memory_space<vmem>>, %arg3: memref<1x2x128xf32, #tpu.memory_space<vmem>>, %arg4: memref<2x2x128xf32, #tpu.memory_space<vmem>>) attributes {dimension_semantics = [#tpu.dimension_semantics<parallel>, #tpu.dimension_semantics<arbitrary>], iteration_bounds = array<i64: 1, 1>, scalar_prefetch = 0 : i64, scratch_operands = 0 : i64, tpu.core_type = #tpu.core_type<tc>, window_params = [{transform_indices = @transform_0, window_bounds = array<i64: 2, 2, 128>}, {transform_indices = @transform_1, window_bounds = array<i64: 1, 2, 128>}, {transform_indices = @transform_2, window_bounds = array<i64: 2, 2, 128>}]} {
    %c0 = arith.constant 0 : index
    %c0_0 = arith.constant 0 : index
    %c0_1 = arith.constant 0 : index
    %0 = vector.load %arg2[%c0, %c0_0, %c0_1] : memref<2x2x128xf32, #tpu.memory_space<vmem>>, vector<2x2x128xf32>
    %c0_2 = arith.constant 0 : index
    %c0_3 = arith.constant 0 : index
    %c0_4 = arith.constant 0 : index
    %1 = vector.load %arg3[%c0_2, %c0_3, %c0_4] : memref<1x2x128xf32, #tpu.memory_space<vmem>>, vector<1x2x128xf32>
    %cst = arith.constant 5.65685415 : f32
    %2 = vector.broadcast %cst : f32 to vector<2x2x128xf32>
    %3 = arith.mulf %0, %2 : vector<2x2x128xf32>
    %4 = vector.broadcast %1 : vector<1x2x128xf32> to vector<2x2x128xf32>
    %5 = arith.addf %3, %4 : vector<2x2x128xf32>
    %c0_5 = arith.constant 0 : index
    %c0_6 = arith.constant 0 : index
    %c0_7 = arith.constant 0 : index
    %6 = vector.load %arg4[%c0_5, %c0_6, %c0_7] : memref<2x2x128xf32, #tpu.memory_space<vmem>>, vector<2x2x128xf32>
    tpu.vector_store %arg4[%c0_5, %c0_6, %c0_7], %5 {strides = array<i32>} : memref<2x2x128xf32, #tpu.memory_space<vmem>>, vector<2x2x128xf32>,
    return
  }
  func.func @transform_0(%arg0: i32, %arg1: i32) -> (i32, i32, i32) {
    %c0_i32 = arith.constant 0 : i32
    %c0_i32_0 = arith.constant 0 : i32
    return %arg1, %arg0, %c0_i32 : i32, i32, i32
  }
  func.func @transform_1(%arg0: i32, %arg1: i32) -> (i32, i32, i32) {
    %c0_i32 = arith.constant 0 : i32
    %c0_i32_0 = arith.constant 0 : i32
    %c0_i32_1 = arith.constant 0 : i32
    return %c0_i32, %arg0, %c0_i32_0 : i32, i32, i32
  }
  func.func @transform_2(%arg0: i32, %arg1: i32) -> (i32, i32, i32) {
    %c0_i32 = arith.constant 0 : i32
    %c0_i32_0 = arith.constant 0 : i32
    return %arg1, %arg0, %c0_i32 : i32, i32, i32
  }
}

</mosaic_0001>

<bundles_post_ra>
// kernel: tpu_custom_call.1
= control target key start
LH: loop header
LB: loop body
LE: loop exit
PB: predicated region body
PF: predicated region fallthrough
CT: control target
= control target key end

     0   :  { %7 = vsyncpa [#allocation3], 0  ;;  %s156_s0 = inlined_call_operand.hbm [shape: f32[2,2,128], index: 0, kind: input, shape index: {}]   ;;  %s157_s1 = inlined_call_operand.vmem [shape: f32[1,2,128], index: 1, kind: input, shape index: {}]   ;;  %s158_s2 = inlined_call_operand.hbm [shape: f32[2,2,128], index: 2, kind: output, shape index: {}]  }
   0x1   :  { %8 = vsyncpa [#allocation4], 0  ;;  %s104_s9 = smov [#allocation2]   ;;  %s56_s13 = scalar_lea.hbm %s156_s0, 64 }
   0x2   :  { %s14_s10 = sshll.u32 %s104_s9, 4  ;;  %p57_p0 = scmp.ne.s32.totalorder %s156_s0, %s56_s13  ;;  %s15_s10 = int_to_ptr.vmem [resolvable:$true] %s14_s10 }
   0x3   :  { %p60_p1 = scmp.lt.u32.totalorder %s56_s13, %s156_s0 }
   0x5   :  { %p62_p2 = pnand %p60_p1, %p57_p0 }
   0x7   :  { %65 = shalt.err (!%p62_p2)
}
   0x8   :  { %s66_s18 = scalar_lea.vmem %s15_s10, 64  ;;  %p71_p4 = scmp.lt.s32.totalorder %s15_s10, %s15_s10 }
   0x9   :  { %p67_p3 = scmp.ne.s32.totalorder %s15_s10, %s66_s18  ;;  %p72_p5 = scmp.lt.s32.totalorder %s66_s18, %s66_s18 }
   0xb   :  { %p73_p6 = por %p72_p5, %p71_p4 }
   0xd   :  { %p74_p7 = pnand %p73_p6, %p67_p3 }
   0xf   :  { %77 = shalt.err (!%p74_p7)
}
  0x10   :  { %s105_s19 = smov 32   ;;  %s106_s20 = smov 2  }
  0x11   :  { %20 = dma.hbm_to_vmem [thread:$0]  %s156_s0, 64, %s15_s10, [#allocation3], %s105_s19, %s105_s19, %s106_s20  }
  0x12   :  { %100 = dma.done.wait [#allocation3], 64  }
  0x13   :  { %101 = vsyncadd [#allocation3], 4294967232  ;;  %s107_s23 = smov [#allocation5]   ;;  %v26_v0 = vld [vmem:[#allocation2] sm:$0x3] }
  0x14   :  { %s40_s24 = sshll.u32 %s107_s23, 4  ;;  %v28_v1 = vld [vmem:[%s157_s1] sm:$0x3]  ;;  %v27_v2 = vld [vmem:[#allocation2 + $0x2] sm:$0x3]  ;;  %s41_s24 = int_to_ptr.vmem [resolvable:$true] %s40_s24 }
  0x15   :  { %v29_v3 = vmul.f32 5.656854, %v26_v0  ;;  %v30_v4 = vmul.f32 5.656854, %v27_v2  ;;  %s78_s27 = scalar_lea.vmem %s41_s24, 64  ;;  %p83_p9 = scmp.lt.s32.totalorder %s41_s24, %s41_s24 }
  0x16   :  { %p79_p8 = scmp.ne.s32.totalorder %s41_s24, %s78_s27  ;;  %p84_p10 = scmp.lt.s32.totalorder %s78_s27, %s78_s27 }
  0x17   :  { %v31_v5 = vadd.f32 %v29_v3, %v28_v1  ;;  %v32_v6 = vadd.f32 %v30_v4, %v28_v1 }
  0x18   :  { %p85_p11 = por %p84_p10, %p83_p9 }
  0x19   :  { %33 = vst [vmem:[#allocation5] sm:$0x3] %v31_v5  ;;  %34 = vst [vmem:[#allocation5 + $0x2] sm:$0x3] %v32_v6 }
  0x1a   :  { %p86_p12 = pnand %p85_p11, %p79_p8 }
  0x1c   :  { %89 = shalt.err (!%p86_p12)
}
  0x1d   :  { %s90_s29 = scalar_lea.hbm %s158_s2, 64 }
  0x1e   :  { %p91_p13 = scmp.ne.s32.totalorder %s158_s2, %s90_s29  ;;  %p94_p0 = scmp.lt.u32.totalorder %s90_s29, %s158_s2 }
  0x20   :  { %p96_p1 = pnand %p94_p0, %p91_p13 }
  0x22   :  { %99 = shalt.err (!%p96_p1)
}
  0x23   :  { %46 = dma.vmem_to_hbm [thread:$0]  %s41_s24, 64, %s158_s2, [#allocation4], %s105_s19, %s105_s19, %s106_s20  }
  0x24   :  { %102 = dma.done.wait [#allocation4], 64  }
  0x25   :  { %103 = vsyncadd [#allocation4], 4294967232 }
  0x26   :  { %50 = vsyncpa [#allocation3], 1 }
  0x27   :  { %51 = vsyncpa [#allocation4], 1 }

</bundles_post_ra>
